<compile_context>
chip_gen: v7x
topology: tpu7x:2x2x1
jax: 0.10.0
libtpu: 0.0.40
codegen_flags: <defaults>
</compile_context>

<pallas_src>
import functools

import jax
import jax.numpy as jnp
from jax.experimental import pallas as pl
from jax.experimental.pallas import tpu as pltpu


def _spatial_gather_kernel(probs_ref, feats_ref, out_ref, m_ref, l_ref, acc_ref,
                           *, scale, hw_valid, hw_tile):
    # probs_ref: (K, THW)        streamed probs tile (native dtype)
    # feats_ref: (CF_T, THW)     streamed feats tile (native dtype, NOT upcast)
    # out_ref:   (CF_T, K)
    # m_ref:     (K, 1) f32      running row max (online softmax)
    # l_ref:     (K, 1) f32      running row sum of exp
    # acc_ref:   (CF_T, K) f32   unnormalized context accumulator
    hw = pl.program_id(2)
    has_tail = (hw_valid % hw_tile) != 0          # trace-time constant

    @pl.when(hw == 0)
    def _init():
        m_ref[...] = jnp.full_like(m_ref, -1e30)
        l_ref[...] = jnp.zeros_like(l_ref)
        acc_ref[...] = jnp.zeros_like(acc_ref)

    p = probs_ref[...].astype(jnp.float32)                      # (K, THW)
    if scale != 1.0:                                            # trace-time specialization
        p = p * scale
    f = feats_ref[...]                                          # (CF_T, THW), native dtype

    if has_tail:
        # Ragged last tile: the DMA'd tail columns are undefined (possibly
        # NaN/Inf), so mask BOTH operands — probs to -1e30 (exp -> exactly 0)
        # and feats to 0 (so garbage never multiplies into the accumulator).
        col_p = hw * hw_tile + jax.lax.broadcasted_iota(jnp.int32, p.shape, 1)
        p = jnp.where(col_p < hw_valid, p, -1e30)
        col_f = hw * hw_tile + jax.lax.broadcasted_iota(jnp.int32, f.shape, 1)
        f = jnp.where(col_f < hw_valid, f, jnp.zeros_like(f))

    # ---- online softmax update (per class row) ------------------------------
    m_prev = m_ref[...]                                          # (K, 1)
    m_new = jnp.maximum(m_prev, jnp.max(p, axis=-1, keepdims=True))
    alpha = jnp.exp(m_prev - m_new)                              # (K, 1) rescale factor
    e = jnp.exp(p - m_new)                                       # (K, THW) f32, tail == 0
    l_ref[...] = alpha * l_ref[...] + jnp.sum(e, axis=-1, keepdims=True)
    m_ref[...] = m_new

    # ---- MXU: acc[c, k] += sum_hw feats[c, hw] * e[k, hw] --------------------
    # Big operand (feats tile) is the LHS contracted on its minor dim; the
    # small (K, THW) e tile is cast to the feats dtype so bf16 feats hit the
    # bf16 MXU path (accumulation stays f32 via preferred_element_type).
    contrib = jax.lax.dot_general(
        f, e.astype(f.dtype),
        dimension_numbers=(((1,), (1,)), ((), ())),
        preferred_element_type=jnp.float32,
    )                                                            # (CF_T, K)
    alpha_row = jnp.transpose(alpha)                             # (1, K), tiny
    acc_ref[...] = acc_ref[...] * alpha_row + contrib

    @pl.when(hw == pl.num_programs(2) - 1)
    def _finish():
        inv_l = pl.reciprocal(l_ref[...], approx=False)          # (K, 1)
        out_ref[...] = (acc_ref[...] * jnp.transpose(inv_l)).astype(out_ref.dtype)


def spatial_gather(feats, probs, scale=1, *, hw_tile=2048, cf_tile=None):
    """feats: (B, Cf, H, W), probs: (B, K, H, W) -> (B, Cf, K, 1)

    hw_tile: spatial tile width (snapped to a multiple of 128).  2048 keeps a
             Cf=512 f32 feats tile at ~4 MiB/buffer (fits every generation);
             raise it on v6e for a slightly better HBM roofline.
    cf_tile: optional channel split (multiple of 8).  Defaults to the full Cf,
             except for B == 1 where it auto-splits so both v7x TensorCores
             get independent output strips.
    """
    B, Cf, H, W = feats.shape
    _, K, _, _ = probs.shape
    HW = H * W

    # ---- spatial tiling: lane-aligned, NO padding of the HBM inputs ---------
    hw_tile = max(128, (int(hw_tile) // 128) * 128)
    hw_tile = min(hw_tile, pl.cdiv(HW, 128) * 128)
    n_hw = pl.cdiv(HW, hw_tile)

    # ---- channel tiling ------------------------------------------------------
    if cf_tile is None:
        if B == 1 and Cf % 16 == 0 and Cf >= 64:
            cf_tile = Cf // 2        # v7x megacore: feed both TensorCores when B == 1
        else:
            cf_tile = Cf
    assert Cf % cf_tile == 0 and (cf_tile == Cf or cf_tile % 8 == 0), \
        "cf_tile must divide Cf and be a multiple of 8"
    n_cf = Cf // cf_tile

    probs_flat = probs.reshape(B, K, HW)     # unpadded; ragged tail masked in-kernel
    feats_flat = feats.reshape(B, Cf, HW)    # unpadded; no extra HBM pass

    kernel = functools.partial(
        _spatial_gather_kernel,
        scale=float(scale), hw_valid=HW, hw_tile=hw_tile)

    # ---- VMEM budget (double-buffered working set + headroom) ---------------
    def _rup(a, b):
        return -(-a // b) * b

    def _buf_bytes(r, c, dt):
        return _rup(r, 8) * _rup(c, 128) * jnp.dtype(dt).itemsize

    working = (2 * _buf_bytes(cf_tile, hw_tile, feats.dtype)     # feats tiles (pipelined)
               + 2 * _buf_bytes(K, hw_tile, probs.dtype)         # probs tiles (pipelined)
               + 2 * _buf_bytes(cf_tile, K, feats.dtype)         # output block
               + _buf_bytes(cf_tile, K, jnp.float32)             # accumulator
               + 2 * _buf_bytes(K, 1, jnp.float32))              # m, l stats
    vmem_limit = int(min(max(working * 1.4 + (4 << 20), 16 << 20), 100 << 20))

    ctx = pl.pallas_call(
        kernel,
        out_shape=jax.ShapeDtypeStruct((B, Cf, K), feats.dtype),
        grid_spec=pltpu.PrefetchScalarGridSpec(
            num_scalar_prefetch=0,
            grid=(B, n_cf, n_hw),
            in_specs=[
                # probs: streamed (K, hw_tile) tiles (double-buffered)
                pl.BlockSpec((None, K, hw_tile), lambda b, c, hw: (b, 0, hw)),
                # feats: streamed (cf_tile, hw_tile) tiles (double-buffered)
                pl.BlockSpec((None, cf_tile, hw_tile), lambda b, c, hw: (b, c, hw)),
            ],
            out_specs=pl.BlockSpec((None, cf_tile, K), lambda b, c, hw: (b, c, 0)),
            scratch_shapes=[
                pltpu.VMEM((K, 1), jnp.float32),        # running max
                pltpu.VMEM((K, 1), jnp.float32),        # running sum
                pltpu.VMEM((cf_tile, K), jnp.float32),  # unnormalized context
            ],
        ),
        compiler_params=pltpu.CompilerParams(
            dimension_semantics=("parallel", "parallel", "arbitrary"),
            vmem_limit_bytes=vmem_limit,
        ),
    )(probs_flat, feats_flat)                                    # (B, Cf, K)

    # torch: matmul -> (B,K,Cf) -> permute(0,2,1) -> unsqueeze(3).
    # The kernel already emits (B, Cf, K), so only the unit dim remains.
    return ctx[..., None]                                        # (B, Cf, K, 1)


def _reference(feats, probs, scale=1):
    B, Cf, H, W = feats.shape
    K = probs.shape[1]
    p = probs.reshape(B, K, H * W)
    f = feats.reshape(B, Cf, H * W).transpose(0, 2, 1)
    p = jax.nn.softmax(scale * p, axis=2)
    ctx = jnp.einsum("bkh,bhc->bkc", p, f)
    return jnp.transpose(ctx, (0, 2, 1))[..., None]


if __name__ == "__main__":
    key = jax.random.PRNGKey(0)
    k1, k2, k3, k4, k5, k6 = jax.random.split(key, 6)

    # Case 1: two spatial tiles, no ragged tail, full-Cf block, f32.
    B, Cf, K, H, W = 2, 32, 8, 16, 16
    feats = jax.random.normal(k1, (B, Cf, H, W), dtype=jnp.float32)
    probs = jax.random.normal(k2, (B, K, H, W), dtype=jnp.float32)
    out = jax.block_until_ready(spatial_gather(feats, probs, scale=1, hw_tile=128))
    ref = _reference(feats, probs, scale=1)
    assert out.shape == (B, Cf, K, 1), out.shape
    assert jnp.allclose(out, ref, atol=1e-4, rtol=1e-4), \
        float(jnp.max(jnp.abs(out - ref)))

    # Case 2: ragged HW tail (144 % 128 != 0), split Cf, scale != 1 — exercises
    # the in-kernel masking that replaced the wrapper-side jnp.pad.
    H2 = W2 = 12
    feats2 = jax.random.normal(k3, (B, Cf, H2, W2), dtype=jnp.float32)
    probs2 = jax.random.normal(k4, (B, K, H2, W2), dtype=jnp.float32)
    out2 = jax.block_until_ready(
        spatial_gather(feats2, probs2, scale=2, hw_tile=128, cf_tile=16))
    ref2 = _reference(feats2, probs2, scale=2)
    assert out2.shape == (B, Cf, K, 1), out2.shape
    assert jnp.allclose(out2, ref2, atol=1e-4, rtol=1e-4), \
        float(jnp.max(jnp.abs(out2 - ref2)))

    # Case 3: bf16 feats streamed without f32 upcast (bf16 MXU path), B=1.
    feats3 = jax.random.normal(k5, (1, Cf, H, W), dtype=jnp.float32).astype(jnp.bfloat16)
    probs3 = jax.random.normal(k6, (1, K, H, W), dtype=jnp.float32)
    out3 = jax.block_until_ready(spatial_gather(feats3, probs3, scale=1, hw_tile=128))
    ref3 = _reference(feats3.astype(jnp.float32), probs3, scale=1)
    assert out3.shape == (1, Cf, K, 1), out3.shape
    assert jnp.allclose(out3.astype(jnp.float32), ref3, atol=2e-2, rtol=2e-2), \
        float(jnp.max(jnp.abs(out3.astype(jnp.float32) - ref3)))

    print("KERNEL_OK")
</pallas_src>

<mosaic_0001>
module attributes {stable_mosaic.version = 11 : i64} {
  func.func @_spatial_gather_kernel(%arg0: i32, %arg1: i32, %arg2: i32, %arg3: memref<1x8x128xf32, #tpu.memory_space<vmem>>, %arg4: memref<1x32x128xf32, #tpu.memory_space<vmem>>, %arg5: memref<1x32x8xf32, #tpu.memory_space<vmem>>, %arg6: memref<8x1xf32, #tpu.memory_space<vmem>>, %arg7: memref<8x1xf32, #tpu.memory_space<vmem>>, %arg8: memref<32x8xf32, #tpu.memory_space<vmem>>) attributes {dimension_semantics = [#tpu.dimension_semantics<parallel>, #tpu.dimension_semantics<parallel>, #tpu.dimension_semantics<arbitrary>], iteration_bounds = array<i64: 2, 1, 2>, scalar_prefetch = 0 : i64, scratch_operands = 3 : i64, tpu.core_type = #tpu.core_type<tc>, window_params = [{transform_indices = @transform_0, window_bounds = array<i64: 1, 8, 128>}, {transform_indices = @transform_1, window_bounds = array<i64: 1, 32, 128>}, {transform_indices = @transform_2, window_bounds = array<i64: 1, 32, 8>}]} {
    %c0_i32 = arith.constant 0 : i32
    %0 = arith.cmpi eq, %arg2, %c0_i32 : i32
    %1 = arith.extui %0 : i1 to i32
    %c0_i32_0 = arith.constant 0 : i32
    %2 = arith.cmpi ne, %1, %c0_i32_0 : i32
    scf.if %2 {
      %cst_21 = arith.constant -1.000000e+30 : f32
      %33 = vector.broadcast %cst_21 : f32 to vector<8x1xf32>
      %c0_22 = arith.constant 0 : index
      %c0_23 = arith.constant 0 : index
      %34 = vector.load %arg6[%c0_22, %c0_23] : memref<8x1xf32, #tpu.memory_space<vmem>>, vector<8x1xf32>
      tpu.vector_store %arg6[%c0_22, %c0_23], %33 {strides = array<i32>} : memref<8x1xf32, #tpu.memory_space<vmem>>, vector<8x1xf32>,
      %cst_24 = arith.constant 0.000000e+00 : f32
      %35 = vector.broadcast %cst_24 : f32 to vector<8x1xf32>
      %c0_25 = arith.constant 0 : index
      %c0_26 = arith.constant 0 : index
      %36 = vector.load %arg7[%c0_25, %c0_26] : memref<8x1xf32, #tpu.memory_space<vmem>>, vector<8x1xf32>
      tpu.vector_store %arg7[%c0_25, %c0_26], %35 {strides = array<i32>} : memref<8x1xf32, #tpu.memory_space<vmem>>, vector<8x1xf32>,
      %cst_27 = arith.constant 0.000000e+00 : f32
      %37 = vector.broadcast %cst_27 : f32 to vector<32x8xf32>
      %c0_28 = arith.constant 0 : index
      %c0_29 = arith.constant 0 : index
      %38 = vector.load %arg8[%c0_28, %c0_29] : memref<32x8xf32, #tpu.memory_space<vmem>>, vector<32x8xf32>
      tpu.vector_store %arg8[%c0_28, %c0_29], %37 {strides = array<i32>} : memref<32x8xf32, #tpu.memory_space<vmem>>, vector<32x8xf32>,
    } else {
    }
    %c0 = arith.constant 0 : index
    %c0_1 = arith.constant 0 : index
    %c0_2 = arith.constant 0 : index
    %3 = vector.load %arg3[%c0, %c0_1, %c0_2] : memref<1x8x128xf32, #tpu.memory_space<vmem>>, vector<1x8x128xf32>
    %4 = vector.shape_cast %3 : vector<1x8x128xf32> to vector<8x128xf32>
    %c0_3 = arith.constant 0 : index
    %c0_4 = arith.constant 0 : index
    %c0_5 = arith.constant 0 : index
    %5 = vector.load %arg4[%c0_3, %c0_4, %c0_5] : memref<1x32x128xf32, #tpu.memory_space<vmem>>, vector<1x32x128xf32>
    %6 = vector.shape_cast %5 : vector<1x32x128xf32> to vector<32x128xf32>
    %c0_6 = arith.constant 0 : index
    %c0_7 = arith.constant 0 : index
    %7 = vector.load %arg6[%c0_6, %c0_7] : memref<8x1xf32, #tpu.memory_space<vmem>>, vector<8x1xf32>
    %cst = arith.constant dense<0xFF800000> : vector<8xf32>
    %8 = vector.multi_reduction <maximumf>, %4, %cst [1] : vector<8x128xf32> to vector<8xf32>
    %9 = vector.shape_cast %8 : vector<8xf32> to vector<8x1xf32>
    %10 = arith.maximumf %7, %9 : vector<8x1xf32>
    %11 = arith.subf %7, %10 : vector<8x1xf32>
    %12 = math.exp %11 : vector<8x1xf32>
    %13 = vector.broadcast %10 : vector<8x1xf32> to vector<8x128xf32>
    %14 = arith.subf %4, %13 : vector<8x128xf32>
    %15 = math.exp %14 : vector<8x128xf32>
    %c0_8 = arith.constant 0 : index
    %c0_9 = arith.constant 0 : index
    %16 = vector.load %arg7[%c0_8, %c0_9] : memref<8x1xf32, #tpu.memory_space<vmem>>, vector<8x1xf32>
    %17 = arith.mulf %12, %16 : vector<8x1xf32>
    %cst_10 = arith.constant dense<0.000000e+00> : vector<8xf32>
    %18 = vector.multi_reduction <add>, %15, %cst_10 [1] : vector<8x128xf32> to vector<8xf32>
    %19 = vector.shape_cast %18 : vector<8xf32> to vector<8x1xf32>
    %20 = arith.addf %17, %19 : vector<8x1xf32>
    %c0_11 = arith.constant 0 : index
    %c0_12 = arith.constant 0 : index
    %21 = vector.load %arg7[%c0_11, %c0_12] : memref<8x1xf32, #tpu.memory_space<vmem>>, vector<8x1xf32>
    tpu.vector_store %arg7[%c0_11, %c0_12], %20 {strides = array<i32>} : memref<8x1xf32, #tpu.memory_space<vmem>>, vector<8x1xf32>,
    %c0_13 = arith.constant 0 : index
    %c0_14 = arith.constant 0 : index
    %22 = vector.load %arg6[%c0_13, %c0_14] : memref<8x1xf32, #tpu.memory_space<vmem>>, vector<8x1xf32>
    tpu.vector_store %arg6[%c0_13, %c0_14], %10 {strides = array<i32>} : memref<8x1xf32, #tpu.memory_space<vmem>>, vector<8x1xf32>,
    %cst_15 = arith.constant dense<0.000000e+00> : vector<32x8xf32>
    %23 = tpu.matmul %6, %15, %cst_15 {dimension_numbers = #tpu.dot_dimension_numbers<[1], [1], [0], [0], [0, 0, 1, 0], [], []>} : vector<32x128xf32>, vector<8x128xf32>, vector<32x8xf32> -> vector<32x8xf32>
    %24 = tpu.transpose %12, [1, 0] : vector<8x1xf32> -> vector<1x8xf32>
    %c0_16 = arith.constant 0 : index
    %c0_17 = arith.constant 0 : index
    %25 = vector.load %arg8[%c0_16, %c0_17] : memref<32x8xf32, #tpu.memory_space<vmem>>, vector<32x8xf32>
    %26 = vector.broadcast %24 : vector<1x8xf32> to vector<32x8xf32>
    %27 = arith.mulf %25, %26 : vector<32x8xf32>
    %28 = arith.addf %27, %23 : vector<32x8xf32>
    %c0_18 = arith.constant 0 : index
    %c0_19 = arith.constant 0 : index
    %29 = vector.load %arg8[%c0_18, %c0_19] : memref<32x8xf32, #tpu.memory_space<vmem>>, vector<32x8xf32>
    tpu.vector_store %arg8[%c0_18, %c0_19], %28 {strides = array<i32>} : memref<32x8xf32, #tpu.memory_space<vmem>>, vector<32x8xf32>,
    %c1_i32 = arith.constant 1 : i32
    %30 = arith.cmpi eq, %arg2, %c1_i32 : i32
    %31 = arith.extui %30 : i1 to i32
    %c0_i32_20 = arith.constant 0 : i32
    %32 = arith.cmpi ne, %31, %c0_i32_20 : i32
    scf.if %32 {
      %c0_21 = arith.constant 0 : index
      %c0_22 = arith.constant 0 : index
      %33 = vector.load %arg7[%c0_21, %c0_22] : memref<8x1xf32, #tpu.memory_space<vmem>>, vector<8x1xf32>
      %34 = tpu.reciprocal %33 : vector<8x1xf32> -> vector<8x1xf32>
      %c0_23 = arith.constant 0 : index
      %c0_24 = arith.constant 0 : index
      %35 = vector.load %arg8[%c0_23, %c0_24] : memref<32x8xf32, #tpu.memory_space<vmem>>, vector<32x8xf32>
      %36 = tpu.transpose %34, [1, 0] : vector<8x1xf32> -> vector<1x8xf32>
      %37 = vector.broadcast %36 : vector<1x8xf32> to vector<32x8xf32>
      %38 = arith.mulf %35, %37 : vector<32x8xf32>
      %c0_25 = arith.constant 0 : index
      %c0_26 = arith.constant 0 : index
      %c0_27 = arith.constant 0 : index
      %39 = vector.load %arg5[%c0_25, %c0_26, %c0_27] : memref<1x32x8xf32, #tpu.memory_space<vmem>>, vector<1x32x8xf32>
      %40 = vector.shape_cast %39 : vector<1x32x8xf32> to vector<32x8xf32>
      %41 = vector.shape_cast %38 : vector<32x8xf32> to vector<1x32x8xf32>
      tpu.vector_store %arg5[%c0_25, %c0_26, %c0_27], %41 {strides = array<i32>} : memref<1x32x8xf32, #tpu.memory_space<vmem>>, vector<1x32x8xf32>,
    } else {
    }
    return
  }
  func.func @transform_0(%arg0: i32, %arg1: i32, %arg2: i32) -> (i32, i32, i32) {
    %c0_i32 = arith.constant 0 : i32
    %c0_i32_0 = arith.constant 0 : i32
    return %arg0, %c0_i32, %arg2 : i32, i32, i32
  }
  func.func @transform_1(%arg0: i32, %arg1: i32, %arg2: i32) -> (i32, i32, i32) {
    %c0_i32 = arith.constant 0 : i32
    return %arg0, %arg1, %arg2 : i32, i32, i32
  }
  func.func @transform_2(%arg0: i32, %arg1: i32, %arg2: i32) -> (i32, i32, i32) {
    %c0_i32 = arith.constant 0 : i32
    %c0_i32_0 = arith.constant 0 : i32
    return %arg0, %arg1, %c0_i32 : i32, i32, i32
  }
}

</mosaic_0001>

<bundles_post_ra>
// kernel: tpu_custom_call.1
= control target key start
LH: loop header
LB: loop body
LE: loop exit
PB: predicated region body
PF: predicated region fallthrough
CT: control target
= control target key end

     0   :  { %7 = vsyncpa [#allocation6], 0  ;;  %s1108_s0 = inlined_call_operand.hbm [shape: f32[2,8,256], index: 0, kind: input, shape index: {}]   ;;  %s1109_s1 = inlined_call_operand.hbm [shape: f32[2,32,256], index: 1, kind: input, shape index: {}]   ;;  %s1110_s2 = inlined_call_operand.vmem [shape: f32[2,32,8], index: 2, kind: output, shape index: {}]  }
   0x1   :  { %9 = vsyncpa [#allocation6 + $0x1], 0 }
   0x2   :  { %10 = vsyncpa [#allocation8], 0 }
   0x3   :  { %12 = vsyncpa [#allocation8 + $0x1], 0  ;;  %s884_s9 = smov 0   ;;  %s886_s10 = smov 0  }
   0x4   :  { %s888_s11 = smov 0   ;;  %s890_s12 = smov 0  }
   0x5   :  { %s892_s13 = smov 0   ;;  %s894_s14 = smov 0  }
   0x6   :  { %s896_s15 = smov 0   ;;  %s898_s16 = smov 0  }
   0x7 LB: > { %s603_s17 = sadd.s32 4294967295, %s859_s16   ;;  %s30_s18 = sadd.s32 1, %s851_s14  ;;  %s859_s16 = sphi %s898_s16, %s18_s16   ;;  %s855_s15 = sphi %s896_s15, %s1123_s15   ;;  %s851_s14 = sphi %s894_s14, %s1122_s14   ;;  %s847_s13 = sphi %s892_s13, %s1121_s13   ;;  %s843_s12 = sphi %s890_s12, %s1120_s12   ;;  %s839_s11 = sphi %s888_s11, %s1119_s11   ;;  %s835_s10 = sphi %s886_s10, %s1118_s10   ;;  %s831_s9 = sphi %s884_s9, %s1117_s9  }
   0x8   : > { %p31_p0 = scmp.ge.s32.totalorder %s30_s18, 2  ;;  %s37_s19 = sadd.s32 1, %s855_s15 }
   0x9   : > { %s46_s20 = sadd.s32 1, %s839_s11  ;;  %p53_p1 = scmp.ne.s32.totalorder %s839_s11, %s835_s10 }
   0xa   : > { %s1125_s18 = smov (%p31_p0, %s30_s18), 0  ;;  %s1127_s19 = smov (!%p31_p0, %s37_s19), %s855_s15 }
   0xb   : > { %s42_s21 = ssub.s32 %s851_s14, %s1125_s18  ;;  %p54_p2 = scmp.eq.s32.totalorder %s859_s16, 0 }
   0xc   : > { %p39_p3 = scmp.ge.s32.totalorder %s1127_s19, 2  ;;  %p59_p4 = scmp.ne.s32.totalorder %s835_s10, %s831_s9 }
   0xd   : > { %p935_p5 = por %p54_p2, %p53_p1  ;;  %p60_p6 = scmp.eq.s32.totalorder %s603_s17, 0 }
   0xe   : > { %s1129_s19 = smov (%p39_p3, %s1127_s19), 0  ;;  %p649_p8 = scmp.lt.s32.totalorder %s859_s16, 4 }
   0xf   : > { %p941_p7 = por %p60_p6, %p59_p4  ;;  %s41_s24 = ssub.s32 %s855_s15, %s1129_s19 }
  0x10   : > { %s43_s25 = sor.u32 %s42_s21, %s41_s24  ;;  %s949_s26 = sand.u32 1, %s839_s11  }
  0x11   : > { %s1113_s23 = scalar_select %p941_p7, 1, 0 }
  0x12   : > { %p44_p9 = scmp.eq.s32.totalorder %s43_s25, 0  ;;  %s607_s27 = sshll.u32 %s949_s26, 3 }
  0x13   : > { %s608_s28 = sshll.u32 %s855_s15, 1  ;;  %s145_s4 = scalar_lea.vmem [#allocation5], %s607_s27 }
  0x14   : > { %s954_s29 = scalar_select %p44_p9, %s839_s11, %s46_s20  }
  0x15   : > { %s150_s30 = sadd.s32 %s851_s14, %s608_s28  ;;  %s154_s5 = sshll.u32 %s145_s4, 4  ;;  %s962_s5 = int_to_ptr.vmem [resolvable:$true] %s154_s5 }
  0x16   : > { %s609_s3 = sshll.u32 %s150_s30, 7  ;;  %p968_p10 = pnand %p649_p8, %p935_p5 }
  0x17   : > { %s960_s8 = scalar_lea.hbm %s1108_s0, %s609_s3  ;;  %s610_s17 = sshll.u32 %s949_s26, 5 }
  0x18   : > { %s611_s20 = sshll.u32 %s855_s15, 3  ;;  %s142_s21 = scalar_lea.sflag [#allocation6], %s949_s26 }
  0x19   : > { %s729_s24 = scalar_lea.hbm %s960_s8, 128  ;;  %p731_p12 = pneg %p968_p10 }
  0x1a   : > { %p730_p11 = scmp.ne.s32.totalorder %s960_s8, %s729_s24  ;;  %s734_s27 = scalar_lea.hbm %s1108_s0, 512 }
  0x1b   : > { %p735_p1 = scmp.lt.u32.totalorder %s960_s8, %s1108_s0  ;;  %p736_p2 = scmp.lt.u32.totalorder %s734_s27, %s729_s24 }
  0x1c   : > { %p732_p13 = pnand %p731_p12, %p730_p11  ;;  %p738_p4 = scmp.lt.u32.totalorder %s729_s24, %s960_s8 }
  0x1d   : > { %p737_p3 = por %p736_p2, %p735_p1 }
  0x1e   : > { %p733_p0 = pneg %p732_p13 }
  0x1f   : > { %p739_p5 = por %p738_p4, %p737_p3 }
  0x21   : > { %p740_p6 = pnand %p739_p5, %p733_p0 }
  0x23   : > { %743 = shalt.err (!%p740_p6)
}
  0x24   : > { %s744_s3 = scalar_lea.vmem %s962_s5, 128  ;;  %s861_s4 = smov [#allocation5]  }
  0x25   : > { %p745_p8 = scmp.ne.s32.totalorder %s962_s5, %s744_s3  ;;  %s749_s6 = sshll.u32 %s861_s4, 4  ;;  %s750_s6 = int_to_ptr.vmem [resolvable:$false] %s749_s6 }
  0x26   : > { %s751_s7 = scalar_lea.vmem %s750_s6, 256  ;;  %p752_p13 = scmp.lt.s32.totalorder %s962_s5, %s750_s6 }
  0x27   : > { %p747_p9 = pnand %p745_p8, %p731_p12  ;;  %p753_p1 = scmp.lt.s32.totalorder %s751_s7, %s744_s3 }
  0x29   : > { %p748_p11 = pneg %p747_p9  ;;  %p754_p2 = por %p753_p1, %p752_p13 }
  0x2b   : > { %p755_p3 = pnand %p754_p2, %p748_p11 }
  0x2d   : > { %758 = shalt.err (!%p755_p3)
}
  0x2e   : > { %645 = dma.hbm_to_vmem [thread:$0]  (!%p968_p10), %s960_s8, 128, %s962_s5, %s142_s21  }
  0x2f   : > { %s173_s24 = sadd.s32 %s851_s14, %s611_s20  ;;  %p613_p0 = scmp.ge.s32.totalorder %s859_s16, 1 }
  0x30   : > { %p184_p4 = scmp.lt.s32.totalorder %s859_s16, 5  ;;  %s612_s25 = sshll.u32 %s173_s24, 7 }
  0x31   : > { %s1008_s28 = scalar_lea.hbm %s1109_s1, %s612_s25  ;;  %s165_s30 = scalar_lea.vmem [#allocation7], %s610_s17 }
  0x32   : > { %s176_s3 = sshll.u32 %s165_s30, 4  ;;  %p1012_p5 = pnand %p613_p0, %p184_p4  ;;  %s1016_s3 = int_to_ptr.vmem [resolvable:$true] %s176_s3 }
  0x33   : > { %s162_s5 = scalar_lea.sflag [#allocation8], %s949_s26  ;;  %s759_s8 = scalar_lea.hbm %s1008_s28, 512 }
  0x34   : > { %p760_p6 = scmp.ne.s32.totalorder %s1008_s28, %s759_s8  ;;  %s764_s6 = scalar_lea.hbm %s1109_s1, 2048 }
  0x35   : > { %p765_p11 = scmp.lt.u32.totalorder %s1008_s28, %s1109_s1  ;;  %p766_p13 = scmp.lt.u32.totalorder %s764_s6, %s759_s8 }
  0x36   : > { %p762_p8 = pnand %p760_p6, %p731_p12  ;;  %p768_p2 = scmp.lt.u32.totalorder %s759_s8, %s1008_s28 }
  0x37   : > { %p767_p1 = por %p766_p13, %p765_p11 }
  0x38   : > { %p763_p9 = pneg %p762_p8 }
  0x39   : > { %p769_p3 = por %p768_p2, %p767_p1 }
  0x3b   : > { %p770_p0 = pnand %p769_p3, %p763_p9 }
  0x3d   : > { %773 = shalt.err (!%p770_p0)
}
  0x3e   : > { %s774_s24 = scalar_lea.vmem %s1016_s3, 512  ;;  %s862_s25 = smov [#allocation7]  }
  0x3f   : > { %p775_p4 = scmp.ne.s32.totalorder %s1016_s3, %s774_s24  ;;  %s779_s22 = sshll.u32 %s862_s25, 4  ;;  %s780_s22 = int_to_ptr.vmem [resolvable:$false] %s779_s22 }
  0x40   : > { %s781_s27 = scalar_lea.vmem %s780_s22, 1024  ;;  %p782_p7 = scmp.lt.s32.totalorder %s1016_s3, %s780_s22 }
  0x41   : > { %p777_p6 = pnand %p775_p4, %p731_p12  ;;  %p783_p11 = scmp.lt.s32.totalorder %s781_s27, %s774_s24 }
  0x43   : > { %p778_p8 = pneg %p777_p6  ;;  %p784_p13 = por %p783_p11, %p782_p7 }
  0x45   : > { %p785_p1 = pnand %p784_p13, %p778_p8 }
  0x47   : > { %788 = shalt.err (!%p785_p1)
}
  0x48   : > { %s863_s30 = smov 256   ;;  %s864_s8 = smov 128  }
  0x49   : > { %s865_s20 = smov 8   ;;  %188 = sbr.rel (%p1012_p5) target bundleno = 679 (0x2a7), region = 28 }
  0x4a   : > { %648 = dma.hbm_to_vmem [thread:$0]  (!%p968_p10), %s1008_s28, 512, %s1016_s3, %s162_s5, %s863_s30, %s864_s8, %s865_s20  }
  0x4b   : > { %s190_s21 = sand.u32 (!%p1012_p5), 1, %s835_s10   ;;  %p1116_p7 = scmp.ne.s32.totalorder (!%p1012_p5), %s1113_s23, 0 }
  0x4c   : > { %s614_s6 = sshll.u32 (!%p1012_p5), %s190_s21, 3  ;;  %s191_s7 = scalar_lea.sflag (!%p1012_p5), [#allocation6], %s190_s21 }
  0x4d   : > { %s194_s17 = scalar_lea.vmem (!%p1012_p5), [#allocation5], %s614_s6 }
  0x50   : > { %822 = dma.done.wait (%p1116_p7), %s191_s7, 128  }
  0x51   : > { %824 = vsyncadd (%p1116_p7), %s191_s7, 4294967168  ;;  %s615_s24 = sshll.u32 %s190_s21, 5  ;;  %s200_s25 = scalar_lea.sflag [#allocation8], %s190_s21 }
  0x52   : > { %s1051_s9 = scalar_lea.vmem [#allocation7], %s615_s24 }
  0x53   : > { %826 = dma.done.wait (%p1116_p7), %s200_s25, 512  }
  0x54   : > { %828 = vsyncadd (%p1116_p7), %s200_s25, 4294966784  ;;  %p235_p10 = scmp.lt.s32.totalorder %s847_s13, 1  ;;  %p618_p12 = scmp.ne.s32.totalorder %s843_s12, 0 }
  0x55   : > { %vm248_vm0 = vcmask (!%p618_p12), 7168   ;;  %vm251_vm1 = vcmask (!%p618_p12), 64512   ;;  %v866_v0 = vmov (!%p618_p12), -1e+30   ;;  %v867_v1 = vmov (!%p618_p12), 0.0  }
  0x56   : > { %s1131_s13 = smov (!%p235_p10, %s847_s13), 1  ;;  %247 = sbr.rel (%p618_p12) target bundleno = 93 (0x5d), region = 40 }
  0x57   : > { %s622_s26 = sshll.u32 %s1131_s13, 5  ;;  %249 = vst.msk [vmem:[#allocation2] sm:$0xff] (!%p618_p12), %vm248_vm0, %v866_v0  ;;  %250 = vst.msk [vmem:[#allocation3] sm:$0xff] (!%p618_p12), %vm248_vm0, %v867_v1 }
  0x58   : > { %s1062_s4 = scalar_lea.vmem %s1110_s2, %s622_s26  ;;  %252 = vst.msk [vmem:[#allocation4] sm:$0xff] (!%p618_p12), %vm251_vm1, %v867_v1  ;;  %253 = vst.msk [vmem:[#allocation4 + $0x8] sm:$0xff] (!%p618_p12), %vm251_vm1, %v867_v1 }
  0x59   : > { %254 = vst.msk [vmem:[#allocation4 + $0x10] sm:$0xff] (!%p618_p12), %vm251_vm1, %v867_v1  ;;  %255 = vst.msk [vmem:[#allocation4 + $0x18] sm:$0xff] (!%p618_p12), %vm251_vm1, %v867_v1 }
  0x5d PF: > { %v256_v2 = vld [vmem:[%s194_s17] sm:$0xff]  ;;  %v868_v3 = vmov 0   ;;  %vm281_vm2 = vcmask 7168   ;;  %v257_v8 = vld [vmem:[%s1051_s9] sm:$0xff]  ;;  %v258_v14 = vld [vmem:[%s1051_s9 + $0x8] sm:$0xff]  ;;  %v405_v22 = vlaneseq  ;;  %vm417_vm3 = vcmask 64512  }
  0x5e   : > { %262 = vmax.xlane.f32.xlu0 %v256_v2  ;;  %v261_v4 = vld [vmem:[#allocation2] sm:$0xff]  ;;  %v259_v9 = vld [vmem:[%s1051_s9 + $0x10] sm:$0xff]  ;;  %630 = vmatprep.mubr.f32.mxu0 %v257_v8  ;;  %v260_v15 = vld [vmem:[%s1051_s9 + $0x18] sm:$0xff]  ;;  %p619_p5 = scmp.ne.s32.totalorder %s843_s12, 1 }
  0x5f   : > { %722 = vset.pattern.permute.xlu0 %v868_v3  ;;  %633 = vmatprep.mubr.f32.mxu1 %v259_v9  ;;  %v276_v18 = vld [vmem:[#allocation3] sm:$0xff]  ;;  %v406_v23 = vshrl.u32 %v405_v22, 7  ;;  %v402_v27 = vld [vmem:[#allocation4 + $0x8] sm:$0xff]  ;;  %v401_v29 = vld [vmem:[#allocation4] sm:$0xff] }
  0x60   : > { %v404_v28 = vld [vmem:[#allocation4 + $0x18] sm:$0xff]  ;;  %v403_v30 = vld [vmem:[#allocation4 + $0x10] sm:$0xff] }
  0x61   : > { %v407_v24 = vsub.s32 0, %v406_v23 }
  0xeb   : > { %v263_v5 = vpop.xlane.xlu0 %262 }
  0xec   : > { %v264_v6 = vmax.f32 %v261_v4, %v263_v5 }
  0xee   : > { %v265_v7 = vsub.f32 %v261_v4, %v264_v6  ;;  %283 = vst.msk [vmem:[#allocation2] sm:$0xff] %vm281_vm2, %v264_v6  ;;  %270 = vperm.xlu0 %722, %v264_v6  }
  0xf0   : > { %v266_v16 = vmul.f32 1.442695, %v265_v7 }
 0x16d   : > { %v271_v10 = vpop.permute.xlu0 %270 }
 0x16e   : > { %v273_v11 = vsub.f32 %v256_v2, %v271_v10 }
 0x170   : > { %v274_v12 = vmul.f32 1.442695, %v273_v11 }
 0x172   : > { %723 = vpow2.f32 %v274_v12 }
 0x173   : > { %725 = vpow2.f32 %v266_v16 }
 0x17c   : > { %v724_v13 = vpop.eup %723 }
 0x17d   : > { %278 = vadd.xlane.f32.xlu1 %v724_v13  ;;  %628 = vmatprep.subr.mxu0 %v724_v13  ;;  %v726_v17 = vpop.eup %725 }
 0x17e   : > { %636 = vmatprep.subr.mxu1 %v724_v13  ;;  %629 = vmatpush3.xpose.msra.mxu0 %v724_v13  ;;  %v277_v19 = vmul.f32 %v726_v17, %v276_v18 }
 0x17f   : > { %637 = vmatpush3.xpose.msra.mxu1 %v724_v13 }
 0x181   : > { %631 = vmatmul.mubr.f32.vlgmr.msra.gmra.mrb[0].mxu0 %v258_v14 }
 0x182   : > { %634 = vmatmul.mubr.f32.vlgmr.msra.gmra.mrb[0].mxu1 %v260_v15 }
 0x1b0   : > { %369 = vxpose.xlu1.b32.start.end [1/1] (short) (narrow) %v726_v17, 8 }
 0x20a   : > { %v279_v20 = vpop.xlane.xlu1 %278 }
 0x20b   : > { %v280_v21 = vadd.f32 %v279_v20, %v277_v19 }
 0x20d   : > { %282 = vst.msk [vmem:[#allocation3] sm:$0xff] %vm281_vm2, %v280_v21 }
 0x214   : > { %v426_v43 = vld [vmem:[#allocation3] sm:$0xff] (!%p619_p5) }
 0x215   : > { %727 = vrcp.f32 (!%p619_p5), %v426_v43 }
 0x21f   : > { %v728_v44 = vpop.eup (!%p619_p5), %727 }
 0x220   : > { %432 = vxpose.xlu0.b32.start.end [1/1] (short) (narrow) (!%p619_p5), %v728_v44, 8 }
 0x230   : > { %v385_v25 = vpop.trf.xlu1 }
 0x231   : > { %v408_v26 = vrot.slane %v385_v25, %v407_v24 }
 0x233   : > { %v410_v31 = vmul.f32 %v408_v26, %v402_v27  ;;  %v412_v32 = vmul.f32 %v408_v26, %v404_v28  ;;  %v409_v33 = vmul.f32 %v408_v26, %v401_v29  ;;  %v411_v34 = vmul.f32 %v408_v26, %v403_v30 }
 0x253   : > { %425 = sbr.rel (%p619_p5) target bundleno = 679 (0x2a7), region = 44 }
 0x254   : > { %v632_v35 = vpop.f32.mrb[0].mxu0 }
 0x255   : > { %v414_v36 = vadd.f32 %v632_v35, %v410_v31  ;;  %v635_v37 = vpop.f32.mrb[0].mxu1  ;;  %v350_v38 = vpop.f32.mrb[1].mxu0 }
 0x256   : > { %v416_v39 = vadd.f32 %v635_v37, %v412_v32  ;;  %v413_v40 = vadd.f32 %v409_v33, %v350_v38  ;;  %v360_v41 = vpop.f32.mrb[1].mxu1 }
 0x257   : > { %419 = vst.msk [vmem:[#allocation4 + $0x8] sm:$0xff] %vm417_vm3, %v414_v36  ;;  %v415_v42 = vadd.f32 %v411_v34, %v360_v41 }
 0x258   : > { %421 = vst.msk [vmem:[#allocation4 + $0x18] sm:$0xff] %vm417_vm3, %v416_v39  ;;  %418 = vst.msk [vmem:[#allocation4] sm:$0xff] %vm417_vm3, %v413_v40 }
 0x259   : > { %420 = vst.msk [vmem:[#allocation4 + $0x10] sm:$0xff] %vm417_vm3, %v415_v42 }
 0x25e   : > { %v429_v46 = vld [vmem:[#allocation4 + $0x8] sm:$0xff] }
 0x25f   : > { %v428_v45 = vld [vmem:[#allocation4] sm:$0xff]  ;;  %v431_v48 = vld [vmem:[#allocation4 + $0x18] sm:$0xff] }
 0x260   : > { %v430_v47 = vld [vmem:[#allocation4 + $0x10] sm:$0xff] }
 0x2a0   : > { %v448_v49 = vpop.trf.xlu0 }
 0x2a1   : > { %v467_v50 = vrot.slane %v448_v49, %v407_v24 }
 0x2a3   : > { %v468_v51 = vmul.f32 %v467_v50, %v428_v45  ;;  %v469_v52 = vmul.f32 %v467_v50, %v429_v46  ;;  %v470_v53 = vmul.f32 %v467_v50, %v430_v47  ;;  %v471_v54 = vmul.f32 %v467_v50, %v431_v48 }
 0x2a5   : > { %472 = vst.msk [vmem:[%s1062_s4] sm:$0xff] %vm417_vm3, %v468_v51  ;;  %473 = vst.msk [vmem:[%s1062_s4 + $0x8] sm:$0xff] %vm417_vm3, %v469_v52 }
 0x2a6   : > { %474 = vst.msk [vmem:[%s1062_s4 + $0x10] sm:$0xff] %vm417_vm3, %v470_v53  ;;  %475 = vst.msk [vmem:[%s1062_s4 + $0x18] sm:$0xff] %vm417_vm3, %v471_v54 }
 0x2a7 PF: > { %s18_s16 = sadd.s32 1, %s859_s16   ;;  %s1117_s9 = smov %s835_s10 }
 0x2a8   : > { %p15_p9 = scmp.ge.s32.totalorder %s18_s16, 6   ;;  %s1118_s10 = smov %s839_s11 }
 0x2a9   : > { %s1119_s11 = smov %s954_s29  ;;  %s1120_s12 = smov %s851_s14 }
 0x2aa   : > { %s1121_s13 = smov %s855_s15  ;;  %s1122_s14 = smov %s1125_s18 }
 0x2ab   : > { %s1123_s15 = smov %s1129_s19  ;;  %17 = sbr.rel (!%p15_p9) target bundleno = 7 (0x7), region = 89 }
 0x2b2   :  { %506 = vsyncpa [#allocation6], 1 }
 0x2b3   :  { %508 = vsyncpa [#allocation6 + $0x1], 1 }
 0x2b4   :  { %509 = vsyncpa [#allocation8], 1 }
 0x2b5   :  { %511 = vsyncpa [#allocation8 + $0x1], 1 }

</bundles_post_ra>
